<compile_context>
chip_gen: v7x
topology: tpu7x:2x2x1
jax: 0.10.0
libtpu: 0.0.40
codegen_flags: <defaults>
</compile_context>

<pallas_src>
import functools

import jax
import jax.numpy as jnp
from jax import lax
from jax.experimental import pallas as pl
from jax.experimental.pallas import tpu as pltpu


# ------------------------------- kernels -----------------------------------


def _bn_fused_kernel(x_ref, w_ref, b_ref, o_ref, *, inv_n, eps):
    """Single-pass BN: full reduction extent (B, HW) lives in one block.

    x_ref/o_ref: (B, Ct, HW); w_ref/b_ref: (Ct, 1) float32.
    """
    x = x_ref[...].astype(jnp.float32)
    # Batch axis first (cheap VPU adds across sub-slabs) ...
    sum_bc = jnp.sum(x, axis=0)                      # (Ct, HW)
    sq_bc = jnp.sum(x * x, axis=0)                   # (Ct, HW)
    # ... then a single cross-lane (XLU) reduce over HW per channel.
    s = jnp.sum(sum_bc, axis=-1, keepdims=True)      # (Ct, 1)
    ss = jnp.sum(sq_bc, axis=-1, keepdims=True)      # (Ct, 1)
    mean = s * inv_n
    var = ss * inv_n - mean * mean                   # biased batch variance
    invstd = lax.rsqrt(var + eps)
    scale = w_ref[...] * invstd                      # (Ct, 1)
    shift = b_ref[...] - mean * scale                # (Ct, 1)
    # Re-read the input block for the apply so no full-block f32 temporary
    # stays live across the reduction.
    o_ref[...] = (x_ref[...].astype(jnp.float32) * scale[None]
                  + shift[None]).astype(o_ref.dtype)


def _bn_stats_kernel(x_ref, sum_ref, sq_ref):
    """Two-pass fallback, pass 1: accumulate per-channel sum / sum-of-squares.

    Grid = (channel tiles, HW tiles); the HW axis is "arbitrary" and the
    (Ct, 1) outputs stay resident across it (accumulator pattern).
    """
    @pl.when(pl.program_id(1) == 0)
    def _():
        sum_ref[...] = jnp.zeros_like(sum_ref)
        sq_ref[...] = jnp.zeros_like(sq_ref)

    x = x_ref[...].astype(jnp.float32)               # (B, Ct, Ht)
    sum_bc = jnp.sum(x, axis=0)
    sq_bc = jnp.sum(x * x, axis=0)
    sum_ref[...] += jnp.sum(sum_bc, axis=-1, keepdims=True)
    sq_ref[...] += jnp.sum(sq_bc, axis=-1, keepdims=True)


def _bn_apply_kernel(x_ref, scale_ref, shift_ref, o_ref):
    """Two-pass fallback, pass 2: elementwise o = x * scale + shift."""
    o_ref[...] = (x_ref[...].astype(jnp.float32) * scale_ref[...][None]
                  + shift_ref[...][None]).astype(o_ref.dtype)


# --------------------------- tile / VMEM sizing -----------------------------

_DEFAULT_VMEM_CAP = 64 * 1024 * 1024   # conservative fallback: v7x per-TC VMEM


def _vmem_capacity_bytes():
    try:
        return int(pltpu.get_tpu_info().vmem_capacity_bytes)
    except Exception:
        return _DEFAULT_VMEM_CAP


def _largest_valid_ct(C, cap):
    """Largest channel tile <= cap that is C itself or a multiple-of-8 divisor
    of C (the (8, 128) sublane rule). None if nothing legal fits."""
    if C <= cap:
        return C
    best = None
    ct = 8
    while ct <= min(cap, C // 2):
        if C % ct == 0:
            best = ct
        ct += 8
    return best


def _vmem_limit_bytes(footprint, vmem_cap):
    # Headroom above our footprint estimate, capped below physical per-core VMEM
    # (~108 MiB on 128 MiB v5e/v6e, ~59 MiB on 64 MiB v7x).
    return int(min(0.92 * vmem_cap, max(footprint + (16 << 20), 32 << 20)))


def _pick_two_pass_tiles(C, HW, B, itemsize, budget):
    """(ct, ht) for the two-pass path: ht a lane-dense tile of HW."""
    per_elem = B * (4 * itemsize + 2 * 4)
    if HW % 128 == 0:
        ht_candidates = [k * 128 for k in range(HW // 128, 0, -1)
                         if HW % (k * 128) == 0]
    else:
        ht_candidates = [HW]
    for ht in ht_candidates:
        max_ct = budget // (per_elem * ht)
        mega_cap = C // 2 if C >= 16 else C
        ct = _largest_valid_ct(C, min(max_ct, mega_cap))
        if ct is None:
            ct = _largest_valid_ct(C, max_ct)
        if ct is not None:
            return ct, ht
    # Nothing fits the budget: use the smallest legal tiles anyway.
    return (8 if C % 8 == 0 else C), ht_candidates[-1]


# -------------------------------- wrappers ----------------------------------


def _dynamic_batch_norm_2d_two_pass(x, w, b, out_dtype, B, C, H, W, eps,
                                    itemsize, budget, vmem_cap):
    HW = H * W
    ct, ht = _pick_two_pass_tiles(C, HW, B, itemsize, budget)
    n_c, n_h = C // ct, HW // ht
    footprint = ct * ht * B * (4 * itemsize + 2 * 4)
    vmem_limit = _vmem_limit_bytes(footprint, vmem_cap)

    # Pass 1: per-channel sum / sum-of-squares (HW axis is the reduction).
    sums, sqs = pl.pallas_call(
        _bn_stats_kernel,
        out_shape=(jax.ShapeDtypeStruct((C, 1), jnp.float32),
                   jax.ShapeDtypeStruct((C, 1), jnp.float32)),
        grid=(n_c, n_h),
        in_specs=[pl.BlockSpec((B, ct, ht), lambda c, h: (0, c, h))],
        out_specs=(pl.BlockSpec((ct, 1), lambda c, h: (c, 0)),
                   pl.BlockSpec((ct, 1), lambda c, h: (c, 0))),
        compiler_params=pltpu.CompilerParams(
            dimension_semantics=("parallel", "arbitrary"),
            vmem_limit_bytes=vmem_limit,
        ),
    )(x)

    # Tiny per-channel math (C elements) as plain jnp ops between the passes.
    inv_n = 1.0 / float(B * HW)
    mean = sums * inv_n                              # (C, 1)
    var = sqs * inv_n - mean * mean
    invstd = lax.rsqrt(var + float(eps))
    scale = w * invstd                               # (C, 1) f32
    shift = b - mean * scale                         # (C, 1) f32

    # Pass 2: elementwise apply.
    out = pl.pallas_call(
        _bn_apply_kernel,
        out_shape=jax.ShapeDtypeStruct((B, C, HW), out_dtype),
        grid=(n_c, n_h),
        in_specs=[
            pl.BlockSpec((B, ct, ht), lambda c, h: (0, c, h)),
            pl.BlockSpec((ct, 1), lambda c, h: (c, 0)),
            pl.BlockSpec((ct, 1), lambda c, h: (c, 0)),
        ],
        out_specs=pl.BlockSpec((B, ct, ht), lambda c, h: (0, c, h)),
        compiler_params=pltpu.CompilerParams(
            dimension_semantics=("parallel", "parallel"),
            vmem_limit_bytes=vmem_limit,
        ),
    )(x, scale, shift)

    return out.reshape(B, C, H, W)


def dynamic_batch_norm_2d(x_nchw, weight, bias, *, eps=1e-5, channel_tile=None,
                          vmem_budget_bytes=None):
    """Training-mode DynamicBatchNorm2d forward (need_sync=False path).

    x_nchw: (B, C, H, W); weight/bias: (max_feature_dim,) shared, sliced to C.
    """
    B, C, H, W = x_nchw.shape
    HW = H * W
    itemsize = jnp.dtype(x_nchw.dtype).itemsize

    vmem_cap = _vmem_capacity_bytes()
    if vmem_budget_bytes is None:
        # ~0.7 of per-core VMEM: ~90 MiB on 128-MiB v5e/v6e, ~45 MiB on 64-MiB
        # v7x -- keeps double-buffering alive on every generation.
        vmem_budget_bytes = int(0.7 * vmem_cap)

    x = x_nchw.reshape(B, C, HW)              # free reshape, no data movement
    w = weight[:C].astype(jnp.float32).reshape(C, 1)
    b = bias[:C].astype(jnp.float32).reshape(C, 1)
    inv_n = 1.0 / float(B * HW)

    # Realistic per-channel VMEM footprint for the fused path:
    # 2x input + 2x output (double-buffered) blocks plus ~2 full-block f32
    # temporaries (upcast / x*x) -> ~6x slab for f32, ~8x for bf16.
    per_ch = B * HW * (4 * itemsize + 2 * 4)

    if channel_tile is not None:
        ct = int(channel_tile)
        if not (ct == C or ct % 8 == 0) or C % ct != 0:
            raise ValueError(
                f"channel_tile={ct} must divide C={C} and be a multiple of 8 "
                "(or equal to C)")
    else:
        cap_vmem = vmem_budget_bytes // per_ch
        mega_cap = C // 2 if C >= 16 else C   # >=2 tiles -> feed both v7x TCs
        ct = _largest_valid_ct(C, min(cap_vmem, mega_cap))
        if ct is None:
            ct = _largest_valid_ct(C, cap_vmem)  # give up on megacore split
        if ct is None:
            # Even the smallest legal channel slab exceeds the budget: use the
            # two-pass (stats pass + apply pass) structure.
            return _dynamic_batch_norm_2d_two_pass(
                x, w, b, x_nchw.dtype, B, C, H, W, eps, itemsize,
                vmem_budget_bytes, vmem_cap)

    footprint = ct * per_ch
    # NOTE: pipeline_mode=pl.Buffered(3) on the input spec only pays off when a
    # profile shows exposed DMA on 128-MiB-VMEM parts; not enabled by default.
    out = pl.pallas_call(
        functools.partial(_bn_fused_kernel, inv_n=inv_n, eps=float(eps)),
        out_shape=jax.ShapeDtypeStruct((B, C, HW), x_nchw.dtype),
        grid=(C // ct,),
        in_specs=[
            pl.BlockSpec((B, ct, HW), lambda c: (0, c, 0)),
            pl.BlockSpec((ct, 1), lambda c: (c, 0)),
            pl.BlockSpec((ct, 1), lambda c: (c, 0)),
        ],
        out_specs=pl.BlockSpec((B, ct, HW), lambda c: (0, c, 0)),
        compiler_params=pltpu.CompilerParams(
            dimension_semantics=("parallel",),
            vmem_limit_bytes=_vmem_limit_bytes(footprint, vmem_cap),
        ),
    )(x, w, b)

    return out.reshape(B, C, H, W)


# ------------------------------- reference ----------------------------------


def _reference(x_nchw, weight, bias, eps=1e-5):
    C = x_nchw.shape[1]
    x = x_nchw.astype(jnp.float32)
    mean = jnp.mean(x, axis=(0, 2, 3))
    var = jnp.mean(x * x, axis=(0, 2, 3)) - mean * mean
    invstd = 1.0 / jnp.sqrt(var + eps)
    w = weight[:C].astype(jnp.float32)
    b = bias[:C].astype(jnp.float32)
    scale = (w * invstd).reshape(1, C, 1, 1)
    shift = (b - mean * w * invstd).reshape(1, C, 1, 1)
    return (x * scale + shift).astype(x_nchw.dtype)


if __name__ == "__main__":
    key = jax.random.PRNGKey(0)
    kx, kw, kb = jax.random.split(key, 3)

    # Active sub-net uses C <= max_feature_dim; BN affine params are shared.
    max_feature_dim = 8
    B, C, H, W = 2, 4, 16, 16
    x = jax.random.normal(kx, (B, C, H, W), dtype=jnp.float32)
    weight = 1.0 + 0.1 * jax.random.normal(kw, (max_feature_dim,), jnp.float32)
    bias = 0.1 * jax.random.normal(kb, (max_feature_dim,), jnp.float32)

    out = jax.block_until_ready(dynamic_batch_norm_2d(x, weight, bias))
    ref = _reference(x, weight, bias)
    assert out.shape == x.shape and out.dtype == x.dtype
    assert jnp.allclose(out, ref, atol=1e-5, rtol=1e-5)

    # Multi-tile fused path: auto tile picks ct <= C//2 -> grid of >= 2 tiles.
    C2 = 32
    x2 = jax.random.normal(kx, (B, C2, H, W), dtype=jnp.float32)
    w2 = 1.0 + 0.1 * jax.random.normal(kw, (C2,), jnp.float32)
    b2 = 0.1 * jax.random.normal(kb, (C2,), jnp.float32)
    out2 = jax.block_until_ready(dynamic_batch_norm_2d(x2, w2, b2))
    assert jnp.allclose(out2, _reference(x2, w2, b2), atol=1e-5, rtol=1e-5)

    # Explicit (validated) channel tile -> grid=(4,).
    out3 = jax.block_until_ready(
        dynamic_batch_norm_2d(x2, w2, b2, channel_tile=8))
    assert jnp.allclose(out3, _reference(x2, w2, b2), atol=1e-5, rtol=1e-5)

    # bf16 activations (in-register math stays f32).
    x4 = x2.astype(jnp.bfloat16)
    out4 = jax.block_until_ready(dynamic_batch_norm_2d(x4, w2, b2))
    assert out4.dtype == jnp.bfloat16
    assert jnp.allclose(out4.astype(jnp.float32),
                        _reference(x4, w2, b2).astype(jnp.float32),
                        atol=1e-1, rtol=1e-2)

    # Force the two-pass (stats + apply) fallback with a tiny VMEM budget.
    C5 = 16
    x5 = jax.random.normal(kx, (B, C5, H, W), dtype=jnp.float32)
    w5 = 1.0 + 0.1 * jax.random.normal(kw, (C5,), jnp.float32)
    b5 = 0.1 * jax.random.normal(kb, (C5,), jnp.float32)
    out5 = jax.block_until_ready(
        dynamic_batch_norm_2d(x5, w5, b5, vmem_budget_bytes=16 * 1024))
    assert jnp.allclose(out5, _reference(x5, w5, b5), atol=1e-5, rtol=1e-5)

    print("KERNEL_OK")
</pallas_src>

<mosaic_0001>
module attributes {stable_mosaic.version = 11 : i64} {
  func.func @_bn_fused_kernel(%arg0: i32, %arg1: memref<2x4x256xf32, #tpu.memory_space<vmem>>, %arg2: memref<4x1xf32, #tpu.memory_space<vmem>>, %arg3: memref<4x1xf32, #tpu.memory_space<vmem>>, %arg4: memref<2x4x256xf32, #tpu.memory_space<vmem>>) attributes {dimension_semantics = [#tpu.dimension_semantics<parallel>], iteration_bounds = array<i64: 1>, scalar_prefetch = 0 : i64, scratch_operands = 0 : i64, tpu.core_type = #tpu.core_type<tc>, window_params = [{transform_indices = @transform_0, window_bounds = array<i64: 2, 4, 256>}, {transform_indices = @transform_1, window_bounds = array<i64: 4, 1>}, {transform_indices = @transform_2, window_bounds = array<i64: 4, 1>}, {transform_indices = @transform_3, window_bounds = array<i64: 2, 4, 256>}]} {
    %c0 = arith.constant 0 : index
    %c0_0 = arith.constant 0 : index
    %c0_1 = arith.constant 0 : index
    %0 = vector.load %arg1[%c0, %c0_0, %c0_1] : memref<2x4x256xf32, #tpu.memory_space<vmem>>, vector<2x4x256xf32>
    %cst = arith.constant dense<0.000000e+00> : vector<4x256xf32>
    %1 = vector.multi_reduction <add>, %0, %cst [0] : vector<2x4x256xf32> to vector<4x256xf32>
    %2 = arith.mulf %0, %0 : vector<2x4x256xf32>
    %cst_2 = arith.constant dense<0.000000e+00> : vector<4x256xf32>
    %3 = vector.multi_reduction <add>, %2, %cst_2 [0] : vector<2x4x256xf32> to vector<4x256xf32>
    %cst_3 = arith.constant dense<0.000000e+00> : vector<4xf32>
    %4 = vector.multi_reduction <add>, %1, %cst_3 [1] : vector<4x256xf32> to vector<4xf32>
    %5 = vector.shape_cast %4 : vector<4xf32> to vector<4x1xf32>
    %cst_4 = arith.constant dense<0.000000e+00> : vector<4xf32>
    %6 = vector.multi_reduction <add>, %3, %cst_4 [1] : vector<4x256xf32> to vector<4xf32>
    %7 = vector.shape_cast %6 : vector<4xf32> to vector<4x1xf32>
    %cst_5 = arith.constant 0.001953125 : f32
    %8 = vector.broadcast %cst_5 : f32 to vector<4x1xf32>
    %9 = arith.mulf %5, %8 : vector<4x1xf32>
    %cst_6 = arith.constant 0.001953125 : f32
    %10 = vector.broadcast %cst_6 : f32 to vector<4x1xf32>
    %11 = arith.mulf %7, %10 : vector<4x1xf32>
    %12 = arith.mulf %9, %9 : vector<4x1xf32>
    %13 = arith.subf %11, %12 : vector<4x1xf32>
    %cst_7 = arith.constant 9.99999974E-6 : f32
    %14 = vector.broadcast %cst_7 : f32 to vector<4x1xf32>
    %15 = arith.addf %13, %14 : vector<4x1xf32>
    %16 = math.rsqrt %15 : vector<4x1xf32>
    %c0_8 = arith.constant 0 : index
    %c0_9 = arith.constant 0 : index
    %17 = vector.load %arg2[%c0_8, %c0_9] : memref<4x1xf32, #tpu.memory_space<vmem>>, vector<4x1xf32>
    %18 = arith.mulf %17, %16 : vector<4x1xf32>
    %c0_10 = arith.constant 0 : index
    %c0_11 = arith.constant 0 : index
    %19 = vector.load %arg3[%c0_10, %c0_11] : memref<4x1xf32, #tpu.memory_space<vmem>>, vector<4x1xf32>
    %20 = arith.mulf %9, %18 : vector<4x1xf32>
    %21 = arith.subf %19, %20 : vector<4x1xf32>
    %c0_12 = arith.constant 0 : index
    %c0_13 = arith.constant 0 : index
    %c0_14 = arith.constant 0 : index
    %22 = vector.load %arg1[%c0_12, %c0_13, %c0_14] : memref<2x4x256xf32, #tpu.memory_space<vmem>>, vector<2x4x256xf32>
    %23 = vector.shape_cast %18 : vector<4x1xf32> to vector<1x4x1xf32>
    %24 = vector.broadcast %23 : vector<1x4x1xf32> to vector<2x4x256xf32>
    %25 = arith.mulf %22, %24 : vector<2x4x256xf32>
    %26 = vector.shape_cast %21 : vector<4x1xf32> to vector<1x4x1xf32>
    %27 = vector.broadcast %26 : vector<1x4x1xf32> to vector<2x4x256xf32>
    %28 = arith.addf %25, %27 : vector<2x4x256xf32>
    %c0_15 = arith.constant 0 : index
    %c0_16 = arith.constant 0 : index
    %c0_17 = arith.constant 0 : index
    %29 = vector.load %arg4[%c0_15, %c0_16, %c0_17] : memref<2x4x256xf32, #tpu.memory_space<vmem>>, vector<2x4x256xf32>
    tpu.vector_store %arg4[%c0_15, %c0_16, %c0_17], %28 {strides = array<i32>} : memref<2x4x256xf32, #tpu.memory_space<vmem>>, vector<2x4x256xf32>,
    return
  }
  func.func @transform_0(%arg0: i32) -> (i32, i32, i32) {
    %c0_i32 = arith.constant 0 : i32
    %c0_i32_0 = arith.constant 0 : i32
    %c0_i32_1 = arith.constant 0 : i32
    return %c0_i32, %arg0, %c0_i32_0 : i32, i32, i32
  }
  func.func @transform_1(%arg0: i32) -> (i32, i32) {
    %c0_i32 = arith.constant 0 : i32
    %c0_i32_0 = arith.constant 0 : i32
    return %arg0, %c0_i32 : i32, i32
  }
  func.func @transform_2(%arg0: i32) -> (i32, i32) {
    %c0_i32 = arith.constant 0 : i32
    %c0_i32_0 = arith.constant 0 : i32
    return %arg0, %c0_i32 : i32, i32
  }
  func.func @transform_3(%arg0: i32) -> (i32, i32, i32) {
    %c0_i32 = arith.constant 0 : i32
    %c0_i32_0 = arith.constant 0 : i32
    %c0_i32_1 = arith.constant 0 : i32
    return %c0_i32, %arg0, %c0_i32_0 : i32, i32, i32
  }
}

</mosaic_0001>

<bundles_post_ra>
// kernel: tpu_custom_call.1
= control target key start
LH: loop header
LB: loop body
LE: loop exit
PB: predicated region body
PF: predicated region fallthrough
CT: control target
= control target key end

     0   :  { %8 = vsyncpa [#allocation3], 0  ;;  %s260_s0 = inlined_call_operand.hbm [shape: f32[2,4,256], index: 0, kind: input, shape index: {}]   ;;  %s261_s1 = inlined_call_operand.vmem [shape: f32[4,1], index: 1, kind: input, shape index: {}]   ;;  %s262_s2 = inlined_call_operand.vmem [shape: f32[4,1], index: 2, kind: input, shape index: {}]   ;;  %s263_s3 = inlined_call_operand.hbm [shape: f32[2,4,256], index: 3, kind: output, shape index: {}]  }
   0x1   :  { %9 = vsyncpa [#allocation4], 0  ;;  %s186_s12 = smov [#allocation2]   ;;  %s138_s16 = scalar_lea.hbm %s260_s0, 256 }
   0x2   :  { %s15_s13 = sshll.u32 %s186_s12, 4  ;;  %p139_p0 = scmp.ne.s32.totalorder %s260_s0, %s138_s16  ;;  %s16_s13 = int_to_ptr.vmem [resolvable:$true] %s15_s13 }
   0x3   :  { %p142_p1 = scmp.lt.u32.totalorder %s138_s16, %s260_s0 }
   0x5   :  { %p144_p2 = pnand %p142_p1, %p139_p0 }
   0x7   :  { %147 = shalt.err (!%p144_p2)
}
   0x8   :  { %s148_s21 = scalar_lea.vmem %s16_s13, 256  ;;  %p153_p4 = scmp.lt.s32.totalorder %s16_s13, %s16_s13 }
   0x9   :  { %p149_p3 = scmp.ne.s32.totalorder %s16_s13, %s148_s21  ;;  %p154_p5 = scmp.lt.s32.totalorder %s148_s21, %s148_s21 }
   0xb   :  { %p155_p6 = por %p154_p5, %p153_p4 }
   0xd   :  { %p156_p7 = pnand %p155_p6, %p149_p3 }
   0xf   :  { %159 = shalt.err (!%p156_p7)
}
  0x10   :  { %s187_s22 = smov 128   ;;  %s188_s23 = smov 8  }
  0x11   :  { %21 = dma.hbm_to_vmem [thread:$0]  %s260_s0, 256, %s16_s13, [#allocation3], %s187_s22, %s187_s22, %s188_s23  }
  0x12   :  { %182 = dma.done.wait [#allocation3], 256  }
  0x13   :  { %183 = vsyncadd [#allocation3], 4294967040  ;;  %vm37_vm0 = vcmask 1043456   ;;  %v29_v0 = vld [vmem:[#allocation2] sm:$0xff]  ;;  %v30_v1 = vld [vmem:[#allocation2 + $0x8] sm:$0xff]  ;;  %v189_v26 = vmov 0   ;;  %v86_v42 = vlaneseq }
  0x14   :  { %v33_v2 = vcombine.high %v29_v0, %v29_v0  ;;  %v34_v3 = vcombine.high %v30_v1, %v30_v1  ;;  %v38_v4 = vsel %vm37_vm0, %v29_v0, 0.0  ;;  %v39_v5 = vsel %vm37_vm0, %v30_v1, 0.0  ;;  %132 = vset.pattern.permute.xlu1 %v189_v26  ;;  %133 = vset.pattern.permute.xlu0 %v189_v26  ;;  %v74_v34 = vld [vmem:[%s261_s1] sm:$0xf]  ;;  %s191_s1 = smov [#allocation5]  }
  0x15   :  { %v40_v6 = vadd.f32 %v39_v5, %v38_v4  ;;  %v44_v7 = vmul.f32 %v29_v0, %v29_v0  ;;  %v45_v8 = vmul.f32 %v30_v1, %v30_v1  ;;  %v76_v37 = vld [vmem:[%s262_s2] sm:$0xf]  ;;  %v190_v40 = vmov 839922192   ;;  %s114_s29 = sshll.u32 %s191_s1, 4  ;;  %s115_s29 = int_to_ptr.vmem [resolvable:$true] %s114_s29 }
  0x16   :  { %v41_v9 = vsel %vm37_vm0, %v33_v2, 0.0  ;;  %v42_v10 = vsel %vm37_vm0, %v34_v3, 0.0  ;;  %v84_v41 = vunpack.c.l.s4 %v190_v40  ;;  %v87_v44 = vshrl.u32 %v86_v42, 7  ;;  %s160_s2 = scalar_lea.vmem %s115_s29, 256  ;;  %p165_p9 = scmp.lt.s32.totalorder %s115_s29, %s115_s29 }
  0x17   :  { %v43_v11 = vadd.f32 %v42_v10, %v41_v9  ;;  %v58_v12 = vsel %vm37_vm0, %v40_v6, 0.0  ;;  %v48_v13 = vcombine.high %v44_v7, %v44_v7  ;;  %v49_v14 = vcombine.high %v45_v8, %v45_v8  ;;  %p161_p8 = scmp.ne.s32.totalorder %s115_s29, %s160_s2  ;;  %p166_p10 = scmp.lt.s32.totalorder %s160_s2, %s160_s2 }
  0x18   :  { %v52_v15 = vsel %vm37_vm0, %v44_v7, 0.0  ;;  %v53_v16 = vsel %vm37_vm0, %v45_v8, 0.0  ;;  %v85_v43 = vunpack.c.0.s8 %v84_v41 }
  0x19   :  { %v59_v17 = vsel %vm37_vm0, %v43_v11, 0.0  ;;  %v54_v18 = vadd.f32 %v53_v16, %v52_v15  ;;  %v55_v19 = vsel %vm37_vm0, %v48_v13, 0.0  ;;  %v56_v20 = vsel %vm37_vm0, %v49_v14, 0.0  ;;  %p167_p11 = por %p166_p10, %p165_p9 }
  0x1a   :  { %v60_v21 = vadd.f32 %v59_v17, %v58_v12  ;;  %v57_v22 = vadd.f32 %v56_v20, %v55_v19  ;;  %v88_v45 = vsub.s32 %v85_v43, %v87_v44 }
  0x1b   :  { %v63_v23 = vsel %vm37_vm0, %v54_v18, 0.0  ;;  %p168_p12 = pnand %p167_p11, %p161_p8 }
  0x1c   :  { %61 = vadd.xlane.f32.xlu0 %v60_v21  ;;  %v64_v24 = vsel %vm37_vm0, %v57_v22, 0.0 }
  0x1d   :  { %v65_v25 = vadd.f32 %v64_v24, %v63_v23 }
  0x20   :  { %66 = vadd.xlane.f32.xlu0 %v65_v25 }
  0xa9   :  { %v62_v27 = vpop.xlane.xlu0 %61 }
  0xaa   :  { %v68_v28 = vmul.f32 0.001953125, %v62_v27 }
  0xac   :  { %v70_v30 = vmul.f32 %v68_v28, %v68_v28 }
  0xad   :  { %v67_v29 = vpop.xlane.xlu0 %66 }
  0xae   :  { %v69_v31 = vmul.f32 0.001953125, %v67_v29 }
  0xb0   :  { %v71_v32 = vsub.f32 %v69_v31, %v70_v30 }
  0xb2   :  { %v72_v33 = vadd.f32 1e-05, %v71_v32 }
  0xb4   :  { %136 = vrsqrt.f32 %v72_v33 }
  0xbe   :  { %v137_v35 = vpop.eup %136 }
  0xbf   :  { %v75_v36 = vmul.f32 %v137_v35, %v74_v34 }
  0xc1   :  { %81 = vperm.xlu1 %132, %v75_v36   ;;  %v77_v38 = vmul.f32 %v75_v36, %v68_v28 }
  0xc3   :  { %v78_v39 = vsub.f32 %v76_v37, %v77_v38 }
  0xc5   :  { %95 = vperm.xlu1 %132, %v78_v39  }
 0x140   :  { %v82_v46 = vpop.permute.xlu1 %81 }
 0x141   :  { %v89_v47 = vrot.slane %v82_v46, %v88_v45 }
 0x143   :  { %v91_v49 = vmul.f32 %v89_v47, %v29_v0  ;;  %v92_v50 = vmul.f32 %v89_v47, %v30_v1 }
 0x144   :  { %v96_v48 = vpop.permute.xlu1 %95 }
 0x145   :  { %v103_v51 = vrot.slane %v96_v48, %v88_v45 }
 0x147   :  { %v105_v52 = vadd.f32 %v103_v51, %v91_v49  ;;  %v106_v53 = vadd.f32 %v103_v51, %v92_v50 }
 0x149   :  { %107 = vst [vmem:[#allocation5] sm:$0xff] %v105_v52  ;;  %108 = vst [vmem:[#allocation5 + $0x8] sm:$0xff] %v106_v53 }
 0x14a   :  { %171 = shalt.err (!%p168_p12)
}
 0x14b   :  { %s172_s5 = scalar_lea.hbm %s263_s3, 256 }
 0x14c   :  { %p173_p13 = scmp.ne.s32.totalorder %s263_s3, %s172_s5  ;;  %p176_p0 = scmp.lt.u32.totalorder %s172_s5, %s263_s3 }
 0x14e   :  { %p178_p1 = pnand %p176_p0, %p173_p13 }
 0x150   :  { %181 = shalt.err (!%p178_p1)
}
 0x151   :  { %120 = dma.vmem_to_hbm [thread:$0]  %s115_s29, 256, %s263_s3, [#allocation4], %s187_s22, %s187_s22, %s188_s23  }
 0x152   :  { %184 = dma.done.wait [#allocation4], 256  }
 0x153   :  { %185 = vsyncadd [#allocation4], 4294967040 }
 0x154   :  { %124 = vsyncpa [#allocation3], 1 }
 0x155   :  { %125 = vsyncpa [#allocation4], 1 }

</bundles_post_ra>
